<compile_context>
chip_gen: v7x
topology: tpu7x:2x2x1
jax: 0.10.0
libtpu: 0.0.40
codegen_flags: <defaults>
</compile_context>

<pallas_src>
import jax
import jax.numpy as jnp
from jax.experimental import pallas as pl
from jax.experimental.pallas import tpu as pltpu

_BN_EPS = 1e-5


def subsystem_kernel(x_ref, w_ref, b_ref, gamma_ref, beta_ref,
                     o_ref, mean_ref, var_ref):
    # Linear: y = x @ W + b           (MXU, f32 accumulate; x/W may already be bf16 in VMEM)
    y = jnp.dot(x_ref[...], w_ref[...], preferred_element_type=jnp.float32) + b_ref[...]
    # Tanh                             (EUP)
    z = jnp.tanh(y)

    # BatchNorm1d, training-mode semantics: per-feature stats over the batch dim, biased
    # variance, eps=1e-5.  Centered (two-pass) variance for better numerics than E[z^2]-mean^2.
    inv_n = 1.0 / z.shape[0]
    mean = jnp.sum(z, axis=0, keepdims=True) * inv_n
    c = z - mean
    var = jnp.sum(c * c, axis=0, keepdims=True) * inv_n
    inv_std = jax.lax.rsqrt(var + _BN_EPS)

    # Fold BN affine into one per-feature scale ([1, tn] math is ~free); only two full-[B, tn]
    # VPU ops remain (mul + add) on top of the centering subtract already needed for var.
    scale = gamma_ref[...] * inv_std
    o_ref[...] = (c * scale + beta_ref[...]).astype(o_ref.dtype)

    mean_ref[...] = mean
    var_ref[...] = var


def _vmem_capacity_bytes():
    try:
        return int(pltpu.get_tpu_info().vmem_capacity_bytes)
    except Exception:
        return 64 << 20   # conservative: v7x per-TensorCore VMEM


def subsystem_forward(x, w, b, gamma, beta, *, block_n=None,
                      use_bf16_matmul=False, return_batch_stats=False):
    """x: [B, D_in]; w: [D_in, D_out] (pre-transposed nn.Linear weight); b/gamma/beta: [D_out]."""
    x = jnp.asarray(x, jnp.float32)
    w = jnp.asarray(w, jnp.float32)
    B, D_in = x.shape
    D_out = w.shape[1]

    # bf16 conversion happens HERE, before pallas_call, so the HBM->VMEM weight stream (the
    # bottleneck for small/medium B) and the VMEM footprint see the 2x reduction.
    mat_dtype = jnp.bfloat16 if use_bf16_matmul else jnp.float32
    mat_bytes = 2 if use_bf16_matmul else 4

    vmem_cap = _vmem_capacity_bytes()
    # Working budget well below physical VMEM (v7x: 64 MiB/TC) so double-buffering survives.
    vmem_budget = min(int(0.75 * vmem_cap), 100 << 20)

    # Lane-dense feature tiling: tile width is a multiple of 128 (>=256 preferred for the
    # 2x256 MXU); bigger tiles amortize the ~0.35 us per-grid-step overhead.
    if block_n is None:
        block_n = 1024 if vmem_cap >= (100 << 20) else 512
    tn = min(block_n, pl.cdiv(D_out, 128) * 128)
    tn = max(128, (tn // 128) * 128)

    def _tile_vmem(tn_, w_bufs):
        return (B * D_in * mat_bytes                 # x block (grid-invariant, single buffer)
                + w_bufs * D_in * tn_ * mat_bytes    # streamed weight tiles
                + 2 * 3 * tn_ * 4                    # bias / gamma / beta (double-buffered)
                + 2 * (B * tn_ + 2 * tn_) * 4)       # out + mean + var (double-buffered)

    # Shrink tn until the pipeline fits the budget (never below one 128-lane tile).
    while tn > 128 and _tile_vmem(tn, 2) > vmem_budget:
        tn -= 128
    # Deeper buffering on the only per-step streaming input (W) hides DMA jitter, if it fits.
    w_buffers = 3 if _tile_vmem(tn, 3) <= vmem_budget else 2

    d_pad = pl.cdiv(D_out, tn) * tn
    pad = d_pad - D_out

    def _row(v):
        v = jnp.asarray(v, jnp.float32).reshape(1, -1)
        return jnp.pad(v, ((0, 0), (0, pad))) if pad else v

    x_m = x.astype(mat_dtype)
    w_p = jnp.pad(w, ((0, 0), (0, pad))) if pad else w
    w_p = w_p.astype(mat_dtype)
    b_p, g_p, beta_p = _row(b), _row(gamma), _row(beta)
    # Padded columns: W=0, b=0, gamma=0, beta=0  =>  z=0, scale=0, output=0 (no NaNs).

    grid = (d_pad // tn,)

    vmem_limit = int(min(vmem_cap * 7 // 8,
                         max(16 << 20, 4 * _tile_vmem(tn, w_buffers))))

    cost = pl.CostEstimate(
        flops=2 * B * D_in * d_pad + 10 * B * d_pad,
        transcendentals=B * d_pad,                   # tanh
        bytes_accessed=(B * D_in * mat_bytes         # x fetched once (block-invariant)
                        + D_in * d_pad * mat_bytes   # streamed weights
                        + 3 * d_pad * 4              # bias / gamma / beta
                        + (B + 2) * d_pad * 4),      # out + mean + var
    )

    out_shape = (
        jax.ShapeDtypeStruct((B, d_pad), jnp.float32),
        jax.ShapeDtypeStruct((1, d_pad), jnp.float32),
        jax.ShapeDtypeStruct((1, d_pad), jnp.float32),
    )
    out_specs = (
        pl.BlockSpec((B, tn), lambda j: (0, j)),     # normalized output
        pl.BlockSpec((1, tn), lambda j: (0, j)),     # batch mean
        pl.BlockSpec((1, tn), lambda j: (0, j)),     # batch biased variance
    )

    def _run(use_pipeline_modes):
        if use_pipeline_modes:
            # x is grid-invariant: single buffer; W gets the deeper pipeline.
            x_spec = pl.BlockSpec((B, D_in), lambda j: (0, 0),
                                  pipeline_mode=pl.Buffered(1))
            w_spec = pl.BlockSpec((D_in, tn), lambda j: (0, j),
                                  pipeline_mode=pl.Buffered(w_buffers))
        else:
            x_spec = pl.BlockSpec((B, D_in), lambda j: (0, 0))
            w_spec = pl.BlockSpec((D_in, tn), lambda j: (0, j))
        vec_spec = pl.BlockSpec((1, tn), lambda j: (0, j))
        in_specs = [x_spec, w_spec, vec_spec, vec_spec, vec_spec]
        return pl.pallas_call(
            subsystem_kernel,
            out_shape=out_shape,
            grid=grid,
            in_specs=in_specs,
            out_specs=out_specs,
            compiler_params=pltpu.CompilerParams(
                dimension_semantics=("parallel",),
                vmem_limit_bytes=vmem_limit,
            ),
            cost_estimate=cost,
        )(x_m, w_p, b_p, g_p, beta_p)

    try:
        out, mean, var = _run(True)
    except Exception:
        # Fallback if pipeline_mode / Buffered(1) is unsupported: plain double-buffered specs.
        out, mean, var = _run(False)

    out = out[:, :D_out]
    if return_batch_stats:
        # TODO(synk): running_mean/running_var momentum update is module state, applied by
        # caller (PyTorch uses unbiased var = var * n/(n-1) for running_var).
        return out, mean[0, :D_out], var[0, :D_out]
    return out


def reference_forward(x, w, b, gamma, beta, *, use_bf16_matmul=False):
    if use_bf16_matmul:
        y = jnp.dot(x.astype(jnp.bfloat16), w.astype(jnp.bfloat16),
                    preferred_element_type=jnp.float32)
    else:
        y = jnp.dot(x, w, preferred_element_type=jnp.float32)
    y = y + b.reshape(1, -1)
    z = jnp.tanh(y)
    mean = jnp.mean(z, axis=0, keepdims=True)
    var = jnp.mean((z - mean) ** 2, axis=0, keepdims=True)
    return (z - mean) / jnp.sqrt(var + _BN_EPS) * gamma.reshape(1, -1) + beta.reshape(1, -1)


if __name__ == "__main__":
    key = jax.random.PRNGKey(0)
    B, D_in, D_out = 8, 32, 16

    kx, kw, kb = jax.random.split(key, 3)
    x = jax.random.normal(kx, (B, D_in), dtype=jnp.float32)

    # PyTorch-style uniform init bounds for nn.Linear; weight pre-transposed to [D_in, D_out].
    bound = 1.0 / jnp.sqrt(D_in)
    w = jax.random.uniform(kw, (D_in, D_out), minval=-bound, maxval=bound, dtype=jnp.float32)
    b = jax.random.uniform(kb, (D_out,), minval=-bound, maxval=bound, dtype=jnp.float32)
    gamma = jnp.ones((D_out,), jnp.float32)   # BatchNorm1d weight
    beta = jnp.zeros((D_out,), jnp.float32)   # BatchNorm1d bias

    # f32 MXU path (PyTorch-equivalent numerics).
    out = jax.block_until_ready(subsystem_forward(x, w, b, gamma, beta))
    ref = reference_forward(x, w, b, gamma, beta)
    assert out.shape == (B, D_out)
    assert jnp.allclose(out, ref, atol=1e-4, rtol=1e-4)

    # bf16 MXU path (wrapper-side cast; recommended for real D_in/D_out on v5e/v6e/v7x).
    out_bf16 = jax.block_until_ready(
        subsystem_forward(x, w, b, gamma, beta, use_bf16_matmul=True))
    ref_bf16 = reference_forward(x, w, b, gamma, beta, use_bf16_matmul=True)
    assert jnp.allclose(out_bf16, ref_bf16, atol=1e-3, rtol=1e-3)

    # Batch stats for running_mean / running_var updates.
    out2, batch_mean, batch_var = subsystem_forward(
        x, w, b, gamma, beta, return_batch_stats=True)
    jax.block_until_ready((out2, batch_mean, batch_var))
    assert batch_mean.shape == (D_out,) and batch_var.shape == (D_out,)

    print("KERNEL_OK")
</pallas_src>

<mosaic_0001>
module attributes {stable_mosaic.version = 11 : i64} {
  func.func @subsystem_kernel(%arg0: i32, %arg1: memref<8x32xf32, #tpu.memory_space<vmem>>, %arg2: memref<32x128xf32, #tpu.memory_space<vmem>>, %arg3: memref<1x128xf32, #tpu.memory_space<vmem>>, %arg4: memref<1x128xf32, #tpu.memory_space<vmem>>, %arg5: memref<1x128xf32, #tpu.memory_space<vmem>>, %arg6: memref<8x128xf32, #tpu.memory_space<vmem>>, %arg7: memref<1x128xf32, #tpu.memory_space<vmem>>, %arg8: memref<1x128xf32, #tpu.memory_space<vmem>>) attributes {dimension_semantics = [#tpu.dimension_semantics<parallel>], iteration_bounds = array<i64: 1>, scalar_prefetch = 0 : i64, scratch_operands = 0 : i64, tpu.core_type = #tpu.core_type<tc>, window_params = [{pipeline_mode = #tpu.pipeline_mode<synchronous>, transform_indices = @transform_0, window_bounds = array<i64: 8, 32>}, {transform_indices = @transform_1, window_bounds = array<i64: 32, 128>}, {transform_indices = @transform_2, window_bounds = array<i64: 1, 128>}, {transform_indices = @transform_3, window_bounds = array<i64: 1, 128>}, {transform_indices = @transform_4, window_bounds = array<i64: 1, 128>}, {transform_indices = @transform_5, window_bounds = array<i64: 8, 128>}, {transform_indices = @transform_6, window_bounds = array<i64: 1, 128>}, {transform_indices = @transform_7, window_bounds = array<i64: 1, 128>}]} {
    %c0 = arith.constant 0 : index
    %c0_0 = arith.constant 0 : index
    %0 = vector.load %arg1[%c0, %c0_0] : memref<8x32xf32, #tpu.memory_space<vmem>>, vector<8x32xf32>
    %c0_1 = arith.constant 0 : index
    %c0_2 = arith.constant 0 : index
    %1 = vector.load %arg2[%c0_1, %c0_2] : memref<32x128xf32, #tpu.memory_space<vmem>>, vector<32x128xf32>
    %cst = arith.constant dense<0.000000e+00> : vector<8x128xf32>
    %2 = tpu.matmul %0, %1, %cst {dimension_numbers = #tpu.dot_dimension_numbers<[1], [0], [0], [1], [0, 0, 1, 1], [], []>} : vector<8x32xf32>, vector<32x128xf32>, vector<8x128xf32> -> vector<8x128xf32>
    %c0_3 = arith.constant 0 : index
    %c0_4 = arith.constant 0 : index
    %3 = vector.load %arg3[%c0_3, %c0_4] : memref<1x128xf32, #tpu.memory_space<vmem>>, vector<1x128xf32>
    %4 = vector.broadcast %3 : vector<1x128xf32> to vector<8x128xf32>
    %5 = arith.addf %2, %4 : vector<8x128xf32>
    %6 = math.tanh %5 : vector<8x128xf32>
    %cst_5 = arith.constant dense<0.000000e+00> : vector<128xf32>
    %7 = vector.multi_reduction <add>, %6, %cst_5 [0] : vector<8x128xf32> to vector<128xf32>
    %8 = vector.shape_cast %7 : vector<128xf32> to vector<1x128xf32>
    %cst_6 = arith.constant 1.250000e-01 : f32
    %9 = vector.broadcast %cst_6 : f32 to vector<1x128xf32>
    %10 = arith.mulf %8, %9 : vector<1x128xf32>
    %11 = vector.broadcast %10 : vector<1x128xf32> to vector<8x128xf32>
    %12 = arith.subf %6, %11 : vector<8x128xf32>
    %13 = arith.mulf %12, %12 : vector<8x128xf32>
    %cst_7 = arith.constant dense<0.000000e+00> : vector<128xf32>
    %14 = vector.multi_reduction <add>, %13, %cst_7 [0] : vector<8x128xf32> to vector<128xf32>
    %15 = vector.shape_cast %14 : vector<128xf32> to vector<1x128xf32>
    %cst_8 = arith.constant 1.250000e-01 : f32
    %16 = vector.broadcast %cst_8 : f32 to vector<1x128xf32>
    %17 = arith.mulf %15, %16 : vector<1x128xf32>
    %cst_9 = arith.constant 9.99999974E-6 : f32
    %18 = vector.broadcast %cst_9 : f32 to vector<1x128xf32>
    %19 = arith.addf %17, %18 : vector<1x128xf32>
    %20 = math.rsqrt %19 : vector<1x128xf32>
    %c0_10 = arith.constant 0 : index
    %c0_11 = arith.constant 0 : index
    %21 = vector.load %arg4[%c0_10, %c0_11] : memref<1x128xf32, #tpu.memory_space<vmem>>, vector<1x128xf32>
    %22 = arith.mulf %21, %20 : vector<1x128xf32>
    %23 = vector.broadcast %22 : vector<1x128xf32> to vector<8x128xf32>
    %24 = arith.mulf %12, %23 : vector<8x128xf32>
    %c0_12 = arith.constant 0 : index
    %c0_13 = arith.constant 0 : index
    %25 = vector.load %arg5[%c0_12, %c0_13] : memref<1x128xf32, #tpu.memory_space<vmem>>, vector<1x128xf32>
    %26 = vector.broadcast %25 : vector<1x128xf32> to vector<8x128xf32>
    %27 = arith.addf %24, %26 : vector<8x128xf32>
    %c0_14 = arith.constant 0 : index
    %c0_15 = arith.constant 0 : index
    %28 = vector.load %arg6[%c0_14, %c0_15] : memref<8x128xf32, #tpu.memory_space<vmem>>, vector<8x128xf32>
    tpu.vector_store %arg6[%c0_14, %c0_15], %27 {strides = array<i32>} : memref<8x128xf32, #tpu.memory_space<vmem>>, vector<8x128xf32>,
    %c0_16 = arith.constant 0 : index
    %c0_17 = arith.constant 0 : index
    %29 = vector.load %arg7[%c0_16, %c0_17] : memref<1x128xf32, #tpu.memory_space<vmem>>, vector<1x128xf32>
    tpu.vector_store %arg7[%c0_16, %c0_17], %10 {strides = array<i32>} : memref<1x128xf32, #tpu.memory_space<vmem>>, vector<1x128xf32>,
    %c0_18 = arith.constant 0 : index
    %c0_19 = arith.constant 0 : index
    %30 = vector.load %arg8[%c0_18, %c0_19] : memref<1x128xf32, #tpu.memory_space<vmem>>, vector<1x128xf32>
    tpu.vector_store %arg8[%c0_18, %c0_19], %17 {strides = array<i32>} : memref<1x128xf32, #tpu.memory_space<vmem>>, vector<1x128xf32>,
    return
  }
  func.func @transform_0(%arg0: i32) -> (i32, i32) {
    %c0_i32 = arith.constant 0 : i32
    %c0_i32_0 = arith.constant 0 : i32
    %c0_i32_1 = arith.constant 0 : i32
    return %c0_i32, %c0_i32_0 : i32, i32
  }
  func.func @transform_1(%arg0: i32) -> (i32, i32) {
    %c0_i32 = arith.constant 0 : i32
    %c0_i32_0 = arith.constant 0 : i32
    return %c0_i32, %arg0 : i32, i32
  }
  func.func @transform_2(%arg0: i32) -> (i32, i32) {
    %c0_i32 = arith.constant 0 : i32
    %c0_i32_0 = arith.constant 0 : i32
    return %c0_i32, %arg0 : i32, i32
  }
  func.func @transform_3(%arg0: i32) -> (i32, i32) {
    %c0_i32 = arith.constant 0 : i32
    %c0_i32_0 = arith.constant 0 : i32
    return %c0_i32, %arg0 : i32, i32
  }
  func.func @transform_4(%arg0: i32) -> (i32, i32) {
    %c0_i32 = arith.constant 0 : i32
    %c0_i32_0 = arith.constant 0 : i32
    return %c0_i32, %arg0 : i32, i32
  }
  func.func @transform_5(%arg0: i32) -> (i32, i32) {
    %c0_i32 = arith.constant 0 : i32
    %c0_i32_0 = arith.constant 0 : i32
    return %c0_i32, %arg0 : i32, i32
  }
  func.func @transform_6(%arg0: i32) -> (i32, i32) {
    %c0_i32 = arith.constant 0 : i32
    %c0_i32_0 = arith.constant 0 : i32
    return %c0_i32, %arg0 : i32, i32
  }
  func.func @transform_7(%arg0: i32) -> (i32, i32) {
    %c0_i32 = arith.constant 0 : i32
    %c0_i32_0 = arith.constant 0 : i32
    return %c0_i32, %arg0 : i32, i32
  }
}

</mosaic_0001>

<bundles_post_ra>
// kernel: tpu_custom_call.1
= control target key start
LH: loop header
LB: loop body
LE: loop exit
PB: predicated region body
PF: predicated region fallthrough
CT: control target
= control target key end

     0   :  { %13 = vsyncpa [#allocation3], 0  ;;  %s502_s0 = inlined_call_operand.hbm [shape: f32[8,32], index: 0, kind: input, shape index: {}]   ;;  %s503_s1 = inlined_call_operand.hbm [shape: f32[32,128], index: 1, kind: input, shape index: {}]   ;;  %s504_s2 = inlined_call_operand.vmem [shape: f32[1,128], index: 2, kind: input, shape index: {}]   ;;  %s505_s3 = inlined_call_operand.vmem [shape: f32[1,128], index: 3, kind: input, shape index: {}]   ;;  %s506_s4 = inlined_call_operand.vmem [shape: f32[1,128], index: 4, kind: input, shape index: {}]   ;;  %s507_s5 = inlined_call_operand.hbm [shape: f32[8,128], index: 5, kind: output, shape index: {0}]   ;;  %s508_s6 = inlined_call_operand.hbm [shape: f32[1,128], index: 6, kind: output, shape index: {1}]   ;;  %s509_s7 = inlined_call_operand.hbm [shape: f32[1,128], index: 7, kind: output, shape index: {2}]  }
   0x1   :  { %14 = vsyncpa [#allocation6], 0 }
   0x2   :  { %15 = vsyncpa [#allocation4], 0 }
   0x3   :  { %16 = vsyncpa [#allocation9], 0  ;;  %s376_s24 = smov [#allocation2]   ;;  %s377_s26 = smov [#allocation5]  }
   0x4   :  { %s23_s25 = sshll.u32 %s376_s24, 4  ;;  %s32_s27 = sshll.u32 %s377_s26, 4  ;;  %s24_s25 = int_to_ptr.vmem [resolvable:$true] %s23_s25  ;;  %s426_s27 = int_to_ptr.vmem [resolvable:$true] %s32_s27 }
   0x5   :  { %s258_s30 = scalar_lea.hbm %s502_s0, 128 }
   0x6   :  { %p259_p0 = scmp.ne.s32.totalorder %s502_s0, %s258_s30  ;;  %p262_p1 = scmp.lt.u32.totalorder %s258_s30, %s502_s0 }
   0x8   :  { %p264_p2 = pnand %p262_p1, %p259_p0 }
   0xa   :  { %267 = shalt.err (!%p264_p2)
}
   0xb   :  { %s268_s12 = scalar_lea.vmem %s24_s25, 128  ;;  %p273_p4 = scmp.lt.s32.totalorder %s24_s25, %s24_s25 }
   0xc   :  { %p269_p3 = scmp.ne.s32.totalorder %s24_s25, %s268_s12  ;;  %p274_p5 = scmp.lt.s32.totalorder %s268_s12, %s268_s12 }
   0xe   :  { %p275_p6 = por %p274_p5, %p273_p4 }
  0x10   :  { %p276_p7 = pnand %p275_p6, %p269_p3 }
  0x12   :  { %279 = shalt.err (!%p276_p7)
}
  0x13   :  { %26 = dma.hbm_to_vmem [thread:$0]  %s502_s0, 128, %s24_s25, [#allocation3]  }
  0x14   :  { %s280_s17 = scalar_lea.hbm %s503_s1, 512 }
  0x15   :  { %p281_p8 = scmp.ne.s32.totalorder %s503_s1, %s280_s17  ;;  %p284_p9 = scmp.lt.u32.totalorder %s280_s17, %s503_s1 }
  0x17   :  { %p286_p10 = pnand %p284_p9, %p281_p8 }
  0x19   :  { %289 = shalt.err (!%p286_p10)
}
  0x1a   :  { %s290_s22 = scalar_lea.vmem %s426_s27, 512  ;;  %p295_p12 = scmp.lt.s32.totalorder %s426_s27, %s426_s27 }
  0x1b   :  { %p291_p11 = scmp.ne.s32.totalorder %s426_s27, %s290_s22  ;;  %p296_p13 = scmp.lt.s32.totalorder %s290_s22, %s290_s22 }
  0x1d   :  { %p297_p0 = por %p296_p13, %p295_p12 }
  0x1f   :  { %p298_p1 = pnand %p297_p0, %p291_p11 }
  0x21   :  { %301 = shalt.err (!%p298_p1)
}
  0x22   :  { %s378_s0 = smov 128   ;;  %s379_s23 = smov 8  }
  0x23   :  { %38 = dma.hbm_to_vmem [thread:$0]  %s503_s1, 512, %s426_s27, [#allocation6], %s378_s0, %s378_s0, %s379_s23  }
  0x24   :  { %368 = dma.done.wait [#allocation3], 128  }
  0x25   :  { %369 = vsyncadd [#allocation3], 4294967168 }
  0x26   :  { %370 = dma.done.wait [#allocation6], 512  }
  0x27   :  { %371 = vsyncadd [#allocation6], 4294966784  ;;  %v380_v0 = vmov 0.0|0.0   ;;  %vm381_vm0 = vmmov 0   ;;  %v382_v1 = vmov 0.0   ;;  %v52_v2 = vld [vmem:[#allocation5] sm:$0xff] }
  0x28   :  { %238 = vmatprep.subr.bf16.mxu0 %v380_v0  ;;  %235 = vmatprep.mubr.msk.f32.mxu0 %vm381_vm0, %v382_v1  ;;  %v53_v3 = vld [vmem:[#allocation5 + $0x8] sm:$0xff]  ;;  %v54_v4 = vld [vmem:[#allocation5 + $0x10] sm:$0xff]  ;;  %v55_v6 = vld [vmem:[#allocation5 + $0x18] sm:$0xff]  ;;  %vm63_vm1 = vcmask 261120   ;;  %s383_s27 = smov [#allocation8]  }
  0x29   :  { %v239_v5 = vpack.c.bf16 %v53_v3, %v52_v2  ;;  %v242_v7 = vpack.c.bf16 %v55_v6, %v54_v4  ;;  %v51_v8 = vld [vmem:[#allocation2] sm:$0xff]  ;;  %s192_s28 = sshll.u32 %s383_s27, 4  ;;  %s193_s28 = int_to_ptr.vmem [resolvable:$true] %s192_s28 }
  0x2a   :  { %v219_v9 = vld [vmem:[%s504_s2] ss:$0 sm:$0xff]  ;;  %s302_s29 = scalar_lea.vmem %s193_s28, 16  ;;  %s306_s2 = scalar_lea.vmem %s193_s28, 32 }
  0x2b   :  { %240 = vmatpush3.bf16.msra.mxu0 %v239_v5  ;;  %p303_p2 = scmp.ne.s32.totalorder %s193_s28, %s302_s29  ;;  %p307_p3 = scmp.lt.s32.totalorder %s193_s28, %s193_s28 }
  0x2c   :  { %241 = vmatprep.subr.bf16.mxu0 %v380_v0  ;;  %p308_p4 = scmp.lt.s32.totalorder %s306_s2, %s302_s29 }
  0x2e   :  { %p309_p5 = por %p308_p4, %p307_p3 }
  0x2f   :  { %243 = vmatpush3.bf16.msra.mxu0 %v242_v7 }
  0x30   :  { %p310_p6 = pnand %p309_p5, %p303_p2 }
  0x32   :  { %236 = vmatmul.mubr.msk.f32.vlgmr.msra.gmra.mrb[0].mxu0 %vm63_vm1, %v51_v8 }
 0x105   :  { %v133_v10 = vpop.f32.mrb[0].mxu0 }
 0x106   :  { %v134_v11 = vadd.f32 %v219_v9, %v133_v10  ;;  %v237_v12 = vpop.f32.mrb[1].mxu0 }
 0x108   :  { %254 = vtanh.f32 %v134_v11 }
 0x112   :  { %v255_v13 = vpop.eup %254 }
 0x113   :  { %v138_v14 = vrot.slane %v255_v13, 4 }
 0x115   :  { %v139_v15 = vadd.f32 %v255_v13, %v138_v14 }
 0x117   :  { %v140_v16 = vrot.slane %v139_v15, 2 }
 0x119   :  { %v141_v17 = vadd.f32 %v140_v16, %v139_v15 }
 0x11b   :  { %v142_v18 = vrot.slane %v141_v17, 1 }
 0x11d   :  { %v143_v19 = vadd.f32 %v142_v18, %v141_v17 }
 0x11f   :  { %v144_v20 = vmul.f32 0.125, %v143_v19 }
 0x121   :  { %v145_v21 = vsub.f32 %v255_v13, %v144_v20  ;;  %174 = vst [vmem:[#allocation8] sm:$0x1] %v144_v20 }
 0x122   :  { %313 = shalt.err (!%p310_p6)
}
 0x123   :  { %s314_s9 = scalar_lea.hbm %s508_s6, 16 }
 0x124   :  { %p315_p7 = scmp.ne.s32.totalorder %s508_s6, %s314_s9  ;;  %p318_p8 = scmp.lt.u32.totalorder %s314_s9, %s508_s6 }
 0x126   :  { %p320_p9 = pnand %p318_p8, %p315_p7 }
 0x128   :  { %323 = shalt.err (!%p320_p9)
}
 0x129   :  { %195 = dma.vmem_to_hbm [thread:$0]  %s193_s28, 16, %s508_s6, [#allocation9]   ;;  %v146_v22 = vmul.f32 %v145_v21, %v145_v21 }
 0x12a   :  { %s384_s16 = smov [#allocation10]  }
 0x12b   :  { %v147_v23 = vrot.slane %v146_v22, 4  ;;  %s202_s17 = sshll.u32 %s384_s16, 4  ;;  %s203_s17 = int_to_ptr.vmem [resolvable:$true] %s202_s17 }
 0x12c   :  { %s324_s18 = scalar_lea.vmem %s203_s17, 16  ;;  %s328_s19 = scalar_lea.vmem %s203_s17, 32 }
 0x12d   :  { %v148_v24 = vadd.f32 %v147_v23, %v146_v22  ;;  %p325_p10 = scmp.ne.s32.totalorder %s203_s17, %s324_s18  ;;  %p329_p11 = scmp.lt.s32.totalorder %s203_s17, %s203_s17 }
 0x12e   :  { %p330_p12 = scmp.lt.s32.totalorder %s328_s19, %s324_s18 }
 0x12f   :  { %v149_v25 = vrot.slane %v148_v24, 2 }
 0x130   :  { %p331_p13 = por %p330_p12, %p329_p11 }
 0x131   :  { %v150_v26 = vadd.f32 %v149_v25, %v148_v24 }
 0x132   :  { %p332_p0 = pnand %p331_p13, %p325_p10 }
 0x133   :  { %v151_v27 = vrot.slane %v150_v26, 1 }
 0x135   :  { %v152_v28 = vadd.f32 %v151_v27, %v150_v26 }
 0x137   :  { %v153_v29 = vmul.f32 0.125, %v152_v28 }
 0x139   :  { %v154_v30 = vadd.f32 1e-05, %v153_v29  ;;  %175 = vst [vmem:[#allocation10] sm:$0x1] %v153_v29 }
 0x13a   :  { %335 = shalt.err (!%p332_p0)
}
 0x13b   :  { %s336_s21 = scalar_lea.hbm %s509_s7, 16 }
 0x13c   :  { %p337_p1 = scmp.ne.s32.totalorder %s509_s7, %s336_s21  ;;  %p340_p2 = scmp.lt.u32.totalorder %s336_s21, %s509_s7 }
 0x13e   :  { %p342_p3 = pnand %p340_p2, %p337_p1 }
 0x140   :  { %345 = shalt.err (!%p342_p3)
}
 0x141   :  { %205 = dma.vmem_to_hbm [thread:$0]  %s203_s17, 16, %s509_s7, [#allocation9]   ;;  %256 = vrsqrt.f32 %v154_v30  ;;  %v159_v31 = vlaneseq  ;;  %v156_v33 = vld [vmem:[%s505_s3] sm:$0x1] }
 0x142   :  { %v221_v38 = vld [vmem:[%s506_s4] ss:$0 sm:$0xff]  ;;  %s385_s2 = smov [#allocation7]  }
 0x143   :  { %v160_v32 = vshrl.u32 %v159_v31, 7  ;;  %s182_s30 = sshll.u32 %s385_s2, 4  ;;  %s183_s30 = int_to_ptr.vmem [resolvable:$true] %s182_s30 }
 0x144   :  { %s346_s7 = scalar_lea.vmem %s183_s30, 128  ;;  %p351_p5 = scmp.lt.s32.totalorder %s183_s30, %s183_s30 }
 0x145   :  { %v161_v34 = vsub.s32 0, %v160_v32  ;;  %p347_p4 = scmp.ne.s32.totalorder %s183_s30, %s346_s7  ;;  %p352_p6 = scmp.lt.s32.totalorder %s346_s7, %s346_s7 }
 0x147   :  { %p353_p7 = por %p352_p6, %p351_p5 }
 0x149   :  { %p354_p8 = pnand %p353_p7, %p347_p4 }
 0x14b   :  { %v257_v35 = vpop.eup %256 }
 0x14c   :  { %v157_v36 = vmul.f32 %v257_v35, %v156_v33 }
 0x14e   :  { %v162_v37 = vrot.slane %v157_v36, %v161_v34 }
 0x150   :  { %v164_v39 = vmul.f32 %v162_v37, %v145_v21 }
 0x152   :  { %v172_v40 = vadd.f32 %v221_v38, %v164_v39 }
 0x154   :  { %173 = vst [vmem:[#allocation7] sm:$0xff] %v172_v40 }
 0x155   :  { %357 = shalt.err (!%p354_p8)
}
 0x156   :  { %s358_s9 = scalar_lea.hbm %s507_s5, 128 }
 0x157   :  { %p359_p9 = scmp.ne.s32.totalorder %s507_s5, %s358_s9  ;;  %p362_p10 = scmp.lt.u32.totalorder %s358_s9, %s507_s5 }
 0x159   :  { %p364_p11 = pnand %p362_p10, %p359_p9 }
 0x15b   :  { %367 = shalt.err (!%p364_p11)
}
 0x15c   :  { %185 = dma.vmem_to_hbm [thread:$0]  %s183_s30, 128, %s507_s5, [#allocation4]  }
 0x15d   :  { %372 = dma.done.wait [#allocation4], 128  }
 0x15e   :  { %373 = vsyncadd [#allocation4], 4294967168 }
 0x15f   :  { %374 = dma.done.wait [#allocation9], 32  }
 0x160   :  { %375 = vsyncadd [#allocation9], 4294967264 }
 0x161   :  { %215 = vsyncpa [#allocation3], 1 }
 0x162   :  { %216 = vsyncpa [#allocation6], 1 }
 0x163   :  { %217 = vsyncpa [#allocation4], 1 }
 0x164   :  { %218 = vsyncpa [#allocation9], 1 }

</bundles_post_ra>
